<compile_context>
chip_gen: v6e
topology: v6e:2x2x1
jax: 0.10.0
libtpu: 0.0.40
codegen_flags: <defaults>
</compile_context>

<pallas_src>
import jax
import jax.numpy as jnp
from jax import lax
from jax.experimental import pallas as pl
from jax.experimental.pallas import tpu as pltpu


def _round_up(x: int, m: int) -> int:
    return ((x + m - 1) // m) * m


def _make_kernel(*, nce_T: float, eps: float, tm: int, b_pad: int, has_bias: bool):
    inv_T = 1.0 / float(nce_T)
    mask_val = -10.0 * inv_T          # masked_fill(-10.0) followed by /nce_T
    eps_sq = float(eps) * float(eps)  # clamp on squared norm == clamp norm at eps

    def kernel(*refs):
        if has_bias:
            q_ref, knt_ref, kd_ref, bias_ref, o_ref = refs
        else:
            q_ref, knt_ref, kd_ref, o_ref = refs

        i = pl.program_id(0)
        row0 = pl.multiple_of(i * tm, tm)       # first global query row of this block

        # --- query tile: normalize + fold 1/T (rsqrt -> EUP slot, effectively free)
        q = q_ref[...]                          # (tm, d_pad) f32
        q_inv = lax.rsqrt(jnp.maximum(jnp.sum(q * q, axis=-1, keepdims=True), eps_sq))
        qs = q * (q_inv * inv_T)                # qn / T

        # --- positive logits: row-wise dot with the pre-normalized matching k rows
        logits_pos = jnp.sum(qs * kd_ref[...], axis=-1, keepdims=True)    # (tm, 1) f32

        # --- negative logits: (tm, b_pad) block on the MXU.
        # Keys are already bf16 and in (K, N) layout -> no per-step cast / transpose.
        s = jnp.dot(qs.astype(jnp.bfloat16), knt_ref[...],
                    preferred_element_type=jnp.float32)                   # (tm, b_pad)
        if has_bias:
            s = s + bias_ref[...]               # additive -1e30 on padded key columns

        # Diagonal mask (-10/T): depends on the row offset, so done per tile.
        col = lax.broadcasted_iota(jnp.int32, (tm, b_pad), 1)
        row = lax.broadcasted_iota(jnp.int32, (tm, b_pad), 0) + row0
        logits_neg = jnp.where(col == row, mask_val, s)

        # Cross-entropy with target 0 over [logits_pos | logits_neg]:
        #   loss_i = logsumexp(row_i) - logits_pos_i   (f32 throughout)
        m = jnp.maximum(jnp.max(logits_neg, axis=-1, keepdims=True), logits_pos)
        sum_exp = jnp.exp(logits_pos - m) + jnp.sum(
            jnp.exp(logits_neg - m), axis=-1, keepdims=True
        )
        o_ref[...] = m + jnp.log(sum_exp) - logits_pos                    # (tm, 1)

    return kernel


def patchnce_loss_bicut(feat_q, feat_k, nce_T: float = 0.07, *, eps: float = 1e-8,
                        block_rows: int = 256):
    """Pallas implementation of PatchNCELoss_bicut.forward.

    feat_q, feat_k: (B, D) float arrays. Returns loss of shape (B,), float32.
    """
    B = feat_q.shape[0]
    q = feat_q.reshape(B, -1).astype(jnp.float32)
    k = feat_k.reshape(B, -1).astype(jnp.float32)   # .detach() is a forward no-op
    D = q.shape[1]

    # Pad features to 128-lane width and the batch to a whole number of row tiles.
    d_pad = _round_up(max(D, 1), 128)
    if B <= block_rows:
        tm = _round_up(B, 8)
        b_pad = tm
    else:
        tm = _round_up(block_rows, 8)
        b_pad = _round_up(B, tm)

    if d_pad != D or b_pad != B:
        q = jnp.pad(q, ((0, b_pad - B), (0, d_pad - D)))
        k = jnp.pad(k, ((0, b_pad - B), (0, d_pad - D)))

    # --- Hoisted key-side work (one XLA pass, not re-done every grid step):
    # L2-normalize (eps-clamped), keep f32 rows for l_pos, and build the bf16
    # pre-transposed (K, N) operand for the MXU. Zero-padded rows normalize to 0.
    eps_sq = float(eps) * float(eps)
    kn = k * lax.rsqrt(jnp.maximum(jnp.sum(k * k, axis=-1, keepdims=True), eps_sq))
    knt = kn.T.astype(jnp.bfloat16)                  # (d_pad, b_pad) bf16, resident

    has_bias = b_pad > B
    inputs = [q, knt, kn]
    in_specs = [
        pl.BlockSpec((tm, d_pad), lambda i: (i, 0)),                 # q rows (pipelined)
        pl.BlockSpec((d_pad, b_pad), lambda i: (0, 0),
                     pipeline_mode=pl.Buffered(1)),                  # resident keys, 1-buf
        pl.BlockSpec((tm, d_pad), lambda i: (i, 0)),                 # matching kn rows
    ]
    if has_bias:
        bias = jnp.where(jnp.arange(b_pad) >= B, -1e30, 0.0).astype(
            jnp.float32).reshape(1, b_pad)
        inputs.append(bias)
        in_specs.append(pl.BlockSpec((1, b_pad), lambda i: (0, 0),
                                     pipeline_mode=pl.Buffered(1)))

    # Explicit VMEM budget: single-buffered bf16 keys + double-buffered q/kd tiles +
    # (tm, b_pad) f32 temporaries for the logits / exp path, with 2x headroom.
    vmem_need = (d_pad * b_pad * 2            # resident bf16 knT (1 buffer)
                 + 2 * 2 * tm * d_pad * 4     # q + kd tiles, double-buffered
                 + 2 * b_pad * 4              # bias row
                 + 2 * 2 * tm * 4             # output tiles
                 + 6 * tm * b_pad * 4)        # logits / exp temporaries
    vmem_limit = int(min(max(2 * vmem_need, 32 << 20), 64 << 20))

    grid = (b_pad // tm,)
    kernel = _make_kernel(nce_T=nce_T, eps=eps, tm=tm, b_pad=b_pad, has_bias=has_bias)

    out = pl.pallas_call(
        kernel,
        out_shape=jax.ShapeDtypeStruct((b_pad, 1), jnp.float32),
        grid_spec=pltpu.PrefetchScalarGridSpec(
            num_scalar_prefetch=0,
            grid=grid,
            in_specs=in_specs,
            out_specs=pl.BlockSpec((tm, 1), lambda i: (i, 0)),
        ),
        compiler_params=pltpu.CompilerParams(
            dimension_semantics=("parallel",),   # independent row blocks -> megacore
            vmem_limit_bytes=vmem_limit,
        ),
    )(*inputs)
    return out[:B, 0]


def _reference(feat_q, feat_k, nce_T: float = 0.07, eps: float = 1e-8):
    """Pure-JAX reference matching the PyTorch module's forward."""
    B = feat_q.shape[0]
    q = feat_q.reshape(B, -1).astype(jnp.float32)
    k = feat_k.reshape(B, -1).astype(jnp.float32)
    qn = q / jnp.maximum(jnp.linalg.norm(q, axis=-1, keepdims=True), eps)
    kn = k / jnp.maximum(jnp.linalg.norm(k, axis=-1, keepdims=True), eps)
    s = qn @ kn.T
    l_pos = jnp.sum(qn * kn, axis=-1)
    l_neg = jnp.where(jnp.eye(B, dtype=bool), -10.0, s)
    logits = jnp.concatenate([l_pos[:, None], l_neg], axis=1) / nce_T
    return jax.nn.logsumexp(logits, axis=1) - logits[:, 0]


if __name__ == "__main__":
    key = jax.random.PRNGKey(0)
    k1, k2, k3, k4 = jax.random.split(key, 4)
    nce_T = 0.07

    # Case 1: small, single row block; feature dim padded 32 -> 128, no column padding.
    B1, D1 = 8, 32
    fq1 = jax.random.normal(k1, (B1, D1), dtype=jnp.float32)
    fk1 = jax.random.normal(k2, (B1, D1), dtype=jnp.float32)
    loss1 = patchnce_loss_bicut(fq1, fk1, nce_T=nce_T)
    jax.block_until_ready(loss1)
    assert loss1.shape == (B1,) and loss1.dtype == jnp.float32
    ref1 = _reference(fq1, fk1, nce_T=nce_T)
    assert float(jnp.max(jnp.abs(loss1 - ref1))) < 0.3  # bf16 MXU tolerance

    # Case 2: multi-block row tiling + row/column padding (80 -> 96 rows) + bias row.
    B2, D2 = 80, 48
    fq2 = jax.random.normal(k3, (B2, D2), dtype=jnp.float32)
    fk2 = jax.random.normal(k4, (B2, D2), dtype=jnp.float32)
    loss2 = patchnce_loss_bicut(fq2, fk2, nce_T=nce_T, block_rows=32)
    jax.block_until_ready(loss2)
    assert loss2.shape == (B2,) and loss2.dtype == jnp.float32
    ref2 = _reference(fq2, fk2, nce_T=nce_T)
    assert float(jnp.max(jnp.abs(loss2 - ref2))) < 0.3

    assert bool(jnp.all(jnp.isfinite(loss1))) and bool(jnp.all(jnp.isfinite(loss2)))
    print("KERNEL_OK")
</pallas_src>

<mosaic_0001>
module attributes {stable_mosaic.version = 11 : i64} {
  func.func @kernel(%arg0: i32, %arg1: memref<8x128xf32, #tpu.memory_space<vmem>>, %arg2: memref<128x8xbf16, #tpu.memory_space<vmem>>, %arg3: memref<8x128xf32, #tpu.memory_space<vmem>>, %arg4: memref<8x1xf32, #tpu.memory_space<vmem>>) attributes {dimension_semantics = [#tpu.dimension_semantics<parallel>], iteration_bounds = array<i64: 1>, scalar_prefetch = 0 : i64, scratch_operands = 0 : i64, tpu.core_type = #tpu.core_type<tc>, window_params = [{transform_indices = @transform_0, window_bounds = array<i64: 8, 128>}, {pipeline_mode = #tpu.pipeline_mode<synchronous>, transform_indices = @transform_1, window_bounds = array<i64: 128, 8>}, {transform_indices = @transform_2, window_bounds = array<i64: 8, 128>}, {transform_indices = @transform_3, window_bounds = array<i64: 8, 1>}]} {
    %c8_i32 = arith.constant 8 : i32
    %0 = arith.muli %arg0, %c8_i32 : i32
    %1 = tpu.assume_multiple %0, 8 : i32
    %c0 = arith.constant 0 : index
    %c0_0 = arith.constant 0 : index
    %2 = vector.load %arg1[%c0, %c0_0] : memref<8x128xf32, #tpu.memory_space<vmem>>, vector<8x128xf32>
    %3 = arith.mulf %2, %2 : vector<8x128xf32>
    %cst = arith.constant dense<0.000000e+00> : vector<8xf32>
    %4 = vector.multi_reduction <add>, %3, %cst [1] : vector<8x128xf32> to vector<8xf32>
    %5 = vector.shape_cast %4 : vector<8xf32> to vector<8x1xf32>
    %cst_1 = arith.constant 1.000000e-16 : f32
    %6 = vector.broadcast %cst_1 : f32 to vector<8x1xf32>
    %7 = arith.maximumf %5, %6 : vector<8x1xf32>
    %8 = math.rsqrt %7 : vector<8x1xf32>
    %cst_2 = arith.constant 14.2857141 : f32
    %9 = vector.broadcast %cst_2 : f32 to vector<8x1xf32>
    %10 = arith.mulf %8, %9 : vector<8x1xf32>
    %11 = vector.broadcast %10 : vector<8x1xf32> to vector<8x128xf32>
    %12 = arith.mulf %2, %11 : vector<8x128xf32>
    %c0_3 = arith.constant 0 : index
    %c0_4 = arith.constant 0 : index
    %13 = vector.load %arg3[%c0_3, %c0_4] : memref<8x128xf32, #tpu.memory_space<vmem>>, vector<8x128xf32>
    %14 = arith.mulf %12, %13 : vector<8x128xf32>
    %cst_5 = arith.constant dense<0.000000e+00> : vector<8xf32>
    %15 = vector.multi_reduction <add>, %14, %cst_5 [1] : vector<8x128xf32> to vector<8xf32>
    %16 = vector.shape_cast %15 : vector<8xf32> to vector<8x1xf32>
    %17 = arith.truncf %12 : vector<8x128xf32> to vector<8x128xbf16>
    %c0_6 = arith.constant 0 : index
    %c0_7 = arith.constant 0 : index
    %18 = vector.load %arg2[%c0_6, %c0_7] : memref<128x8xbf16, #tpu.memory_space<vmem>>, vector<128x8xbf16>
    %cst_8 = arith.constant dense<0.000000e+00> : vector<8x8xf32>
    %19 = tpu.matmul %17, %18, %cst_8 {dimension_numbers = #tpu.dot_dimension_numbers<[1], [0], [0], [1], [0, 0, 1, 1], [], []>} : vector<8x128xbf16>, vector<128x8xbf16>, vector<8x8xf32> -> vector<8x8xf32>
    %20 = tpu.iota {dimensions = array<i32: 1>} : vector<8x8xi32>
    %21 = tpu.iota {dimensions = array<i32: 0>} : vector<8x8xi32>
    %22 = vector.broadcast %1 : i32 to vector<8x8xi32>
    %23 = arith.addi %21, %22 : vector<8x8xi32>
    %24 = arith.cmpi eq, %20, %23 : vector<8x8xi32>
    %cst_9 = arith.constant -142.857147 : f32
    %25 = vector.broadcast %cst_9 : f32 to vector<8x8xf32>
    %26 = arith.select %24, %25, %19 : vector<8x8xi1>, vector<8x8xf32>
    %cst_10 = arith.constant dense<0xFF800000> : vector<8xf32>
    %27 = vector.multi_reduction <maximumf>, %26, %cst_10 [1] : vector<8x8xf32> to vector<8xf32>
    %28 = vector.shape_cast %27 : vector<8xf32> to vector<8x1xf32>
    %29 = arith.maximumf %28, %16 : vector<8x1xf32>
    %30 = arith.subf %16, %29 : vector<8x1xf32>
    %31 = math.exp %30 : vector<8x1xf32>
    %32 = vector.broadcast %29 : vector<8x1xf32> to vector<8x8xf32>
    %33 = arith.subf %26, %32 : vector<8x8xf32>
    %34 = math.exp %33 : vector<8x8xf32>
    %cst_11 = arith.constant dense<0.000000e+00> : vector<8xf32>
    %35 = vector.multi_reduction <add>, %34, %cst_11 [1] : vector<8x8xf32> to vector<8xf32>
    %36 = vector.shape_cast %35 : vector<8xf32> to vector<8x1xf32>
    %37 = arith.addf %31, %36 : vector<8x1xf32>
    %38 = math.log %37 : vector<8x1xf32>
    %39 = arith.addf %29, %38 : vector<8x1xf32>
    %40 = arith.subf %39, %16 : vector<8x1xf32>
    %c0_12 = arith.constant 0 : index
    %c0_13 = arith.constant 0 : index
    %41 = vector.load %arg4[%c0_12, %c0_13] : memref<8x1xf32, #tpu.memory_space<vmem>>, vector<8x1xf32>
    tpu.vector_store %arg4[%c0_12, %c0_13], %40 {strides = array<i32>} : memref<8x1xf32, #tpu.memory_space<vmem>>, vector<8x1xf32>,
    return
  }
  func.func @transform_0(%arg0: i32) -> (i32, i32) {
    %c0_i32 = arith.constant 0 : i32
    %c0_i32_0 = arith.constant 0 : i32
    return %arg0, %c0_i32 : i32, i32
  }
  func.func @transform_1(%arg0: i32) -> (i32, i32) {
    %c0_i32 = arith.constant 0 : i32
    %c0_i32_0 = arith.constant 0 : i32
    %c0_i32_1 = arith.constant 0 : i32
    return %c0_i32, %c0_i32_0 : i32, i32
  }
  func.func @transform_2(%arg0: i32) -> (i32, i32) {
    %c0_i32 = arith.constant 0 : i32
    %c0_i32_0 = arith.constant 0 : i32
    return %arg0, %c0_i32 : i32, i32
  }
  func.func @transform_3(%arg0: i32) -> (i32, i32) {
    %c0_i32 = arith.constant 0 : i32
    %c0_i32_0 = arith.constant 0 : i32
    return %arg0, %c0_i32 : i32, i32
  }
}

</mosaic_0001>

<bundles_post_ra>
// kernel: tpu_custom_call.1
= control target key start
LH: loop header
LB: loop body
LE: loop exit
PB: predicated region body
PF: predicated region fallthrough
CT: control target
= control target key end

     0   :  { %v221_v1 = vmov 0.0   ;;  %vm222_vm0 = vmmov 0   ;;  %v133_v19 = vlaneseq  ;;  %vm141_vm2 = vcmask 64512   ;;  %s276_s0 = inlined_call_operand.vmem [shape: f32[8,128], index: 0, kind: input, shape index: {}]   ;;  %s277_s1 = inlined_call_operand.vmem [shape: bf16[128,8], index: 1, kind: input, shape index: {}]   ;;  %s278_s2 = inlined_call_operand.vmem [shape: f32[8,128], index: 2, kind: input, shape index: {}]   ;;  %s279_s3 = inlined_call_operand.vmem [shape: f32[8,1], index: 3, kind: output, shape index: {}]  }
   0x1   :  { %v16_v0 = vld [vmem:[%s276_s0] sm:$0xff]  ;;  %183 = vmatprep.subr.bf16.mxu0 %v221_v1  ;;  %v205_v3 = vld [vmem:[%s277_s1 + $0x38] sm:$0xff]   ;;  %v206_v4 = vld [vmem:[%s277_s1 + $0x30] sm:$0xff]   ;;  %199 = vmatprep.mubr.msk.bf16.mxu0 %vm222_vm0, %v221_v1  ;;  %vm160_vm3 = vcmask 7168  }
   0x2   :  { %v17_v2 = vmul.f32 %v16_v0, %v16_v0  ;;  %184 = vmatpush3.bf16.msra.mxu0 %v205_v3  ;;  %v207_v5 = vld [vmem:[%s277_s1 + $0x28] sm:$0xff]   ;;  %v208_v6 = vld [vmem:[%s277_s1 + $0x20] sm:$0xff]   ;;  %v209_v7 = vld [vmem:[%s277_s1 + $0x18] sm:$0xff]   ;;  %v134_v20 = vand.u32 127, %v133_v19  ;;  %v136_v21 = vshrl.u32 %v133_v19, 7 }
   0x3   :  { %185 = vmatprep.subr.bf16.mxu0 %v221_v1  ;;  %v210_v8 = vld [vmem:[%s277_s1 + $0x10] sm:$0xff]   ;;  %v211_v9 = vld [vmem:[%s277_s1 + $0x8] sm:$0xff]   ;;  %v212_v10 = vld [vmem:[%s277_s1] sm:$0xff]  }
   0x4   :  { %18 = vadd.xlane.f32.xlu0 %v17_v2  ;;  %v24_v15 = vld [vmem:[%s278_s2] sm:$0xff]  ;;  %vm139_vm1 = vcmp.eq.s32.totalorder %v134_v20, %v136_v21 }
   0x6   :  { %186 = vmatpush3.bf16.msra.mxu0 %v206_v4 }
   0x7   :  { %187 = vmatprep.subr.bf16.mxu0 %v221_v1 }
   0xa   :  { %188 = vmatpush3.bf16.msra.mxu0 %v207_v5 }
   0xb   :  { %189 = vmatprep.subr.bf16.mxu0 %v221_v1 }
   0xe   :  { %190 = vmatpush3.bf16.msra.mxu0 %v208_v6 }
   0xf   :  { %191 = vmatprep.subr.bf16.mxu0 %v221_v1 }
  0x12   :  { %192 = vmatpush3.bf16.msra.mxu0 %v209_v7 }
  0x13   :  { %193 = vmatprep.subr.bf16.mxu0 %v221_v1 }
  0x16   :  { %194 = vmatpush3.bf16.msra.mxu0 %v210_v8 }
  0x17   :  { %195 = vmatprep.subr.bf16.mxu0 %v221_v1 }
  0x1a   :  { %196 = vmatpush3.bf16.msra.mxu0 %v211_v9 }
  0x1b   :  { %197 = vmatprep.subr.bf16.mxu0 %v221_v1 }
  0x1e   :  { %198 = vmatpush3.bf16.msra.mxu0 %v212_v10 }
  0x8d   :  { %v19_v11 = vpop.xlane.xlu0 %18 }
  0x8e   :  { %v20_v12 = vmax.f32 %v19_v11, 1e-16 }
  0x90   :  { %213 = vrsqrt.f32 %v20_v12 }
  0x9d   :  { %v214_v13 = vpop.eup %213 }
  0x9e   :  { %v22_v14 = vmul.f32 14.285714, %v214_v13 }
  0xa0   :  { %v23_v16 = vmul.f32 %v22_v14, %v16_v0 }
  0xa2   :  { %v28_v17 = vpack.c.bf16 %v23_v16, %v23_v16  ;;  %v25_v18 = vmul.f32 %v24_v15, %v23_v16 }
  0xa4   :  { %200 = vmatmul.mubr.bf16.vlgmr.msra.gmra.mxu0 %v28_v17  ;;  %26 = vadd.xlane.f32.xlu0 %v25_v18 }
 0x12d   :  { %v27_v28 = vpop.xlane.xlu0 %26 }
 0x164   :  { %v127_v22 = vpop.f32.mrf.mxu0 }
 0x165   :  { %v140_v23 = vsel %vm139_vm1, -142.85715, %v127_v22 }
 0x166   :  { %v201_v24 = vpop.f32.mrf.mxu0  ;;  %v142_v25 = vsel %vm141_vm2, %v140_v23, -inf }
 0x167   :  { %143 = vmax.xlane.f32.xlu1 %v142_v25 }
 0x168   :  { %v130_v26 = vpop.f32.mrf.mxu0 }
 0x16a   :  { %v202_v27 = vpop.f32.mrf.mxu0 }
 0x1f0   :  { %v144_v29 = vpop.xlane.xlu1 %143 }
 0x1f1   :  { %v145_v30 = vmax.f32 %v144_v29, %v27_v28 }
 0x1f3   :  { %v149_v31 = vsub.f32 %v140_v23, %v145_v30  ;;  %v146_v35 = vsub.f32 %v27_v28, %v145_v30 }
 0x1f5   :  { %v150_v32 = vmul.f32 1.442695, %v149_v31  ;;  %v147_v36 = vmul.f32 1.442695, %v146_v35 }
 0x1f7   :  { %215 = vpow2.f32 %v150_v32 }
 0x1f8   :  { %217 = vpow2.f32 %v147_v36 }
 0x204   :  { %v216_v33 = vpop.eup %215 }
 0x205   :  { %v152_v34 = vsel %vm141_vm2, %v216_v33, 0.0  ;;  %v218_v37 = vpop.eup %217 }
 0x206   :  { %153 = vadd.xlane.f32.xlu1 %v152_v34 }
 0x28f   :  { %v154_v38 = vpop.xlane.xlu1 %153 }
 0x290   :  { %v155_v39 = vadd.f32 %v218_v37, %v154_v38 }
 0x292   :  { %219 = vlog2.f32 %v155_v39 }
 0x29f   :  { %v220_v40 = vpop.eup %219 }
 0x2a0   :  { %v157_v41 = vmul.f32 0.6931472, %v220_v40 }
 0x2a2   :  { %v158_v42 = vadd.f32 %v157_v41, %v145_v30 }
 0x2a4   :  { %v159_v43 = vsub.f32 %v158_v42, %v27_v28 }
 0x2a6   :  { %161 = vst.msk [vmem:[%s279_s3] sm:$0xff] %vm160_vm3, %v159_v43 }

</bundles_post_ra>
